<compile_context>
chip_gen: v6e
topology: v6e:2x2x1
jax: 0.10.0
libtpu: 0.0.40
codegen_flags: <defaults>
</compile_context>

<pallas_src>
import jax
import jax.numpy as jnp
from jax.experimental import pallas as pl
from jax.experimental.pallas import tpu as pltpu


def aggregation_kernel(l1_ref, l2_ref, wbdT_ref, w1_ref, w2_ref, bias_ref, out_ref):
    # l1_ref: (F1, TB)   l2_ref: (F2, TB)    feature-major, batch on lanes
    # wbdT_ref: (F2, F1) transposed block-diagonal bilinear weight
    # w1_ref: (F1, 1)    w2_ref: (F2, 1)     bias_ref: (1, H)
    # out_ref: (1, TB)   lane-dense output row
    l1 = l1_ref[...]
    l2 = l2_ref[...]

    # second order for all heads in one MXU matmul:
    #   tmp[h*D2+j, b] = sum_i w12[h,i,j] * l1[b,h,i]
    tmp = jnp.dot(wbdT_ref[...], l1, preferred_element_type=jnp.float32)  # (F2, TB)

    # fold the latent_2 first-order term into the same full-width reduce:
    #   sum_f2 (tmp + w2) * l2 == second_order_total + <l2, w2>
    so_fo2 = jnp.sum((tmp + w2_ref[...]) * l2, axis=0, keepdims=True)     # (1, TB)
    fo1 = jnp.sum(l1 * w1_ref[...], axis=0, keepdims=True)                # (1, TB)
    bias_sum = jnp.sum(bias_ref[...])                                     # scalar

    out_ref[...] = (so_fo2 + fo1 + bias_sum).astype(out_ref.dtype)


def _round_up(x, m):
    return (x + m - 1) // m * m


def aggregation_forward(latent_1, latent_2, params, num_heads, tile_b_max=1024):
    """params: dict with w_1 (D1,H,1), w_2 (D2,H,1), w_12 (H,D1,D2,1), bias (1,H,1)."""
    w1, w2, w12, bias = params["w_1"], params["w_2"], params["w_12"], params["bias"]
    D1, D2 = w1.shape[0], w2.shape[0]
    H = num_heads
    F1, F2 = H * D1, H * D2
    B = latent_1.shape[0]
    compute_dtype = jnp.float32

    # ---- weight prep (tiny, done once in the wrapper) ----
    # block-diagonal bilinear weight, pre-transposed to (F2, F1):
    #   W_bd^T[h*D2+j, g*D1+i] = w12[h,i,j] if g == h else 0
    w12s = w12[..., 0].astype(compute_dtype)                       # (H, D1, D2)
    eye_h = jnp.eye(H, dtype=compute_dtype)
    wbdT = jnp.einsum("hij,hg->hjgi", w12s, eye_h).reshape(F2, F1)
    w1_col = jnp.transpose(w1[:, :, 0]).reshape(F1, 1).astype(compute_dtype)
    w2_col = jnp.transpose(w2[:, :, 0]).reshape(F2, 1).astype(compute_dtype)
    bias2 = bias[:, :, 0].astype(compute_dtype)                    # (1, H)

    # ---- batch tiling: lane axis = batch, tile a multiple of 128 ----
    tile_b = min(tile_b_max, _round_up(B, 128))
    B_pad = _round_up(B, tile_b)
    grid = (B_pad // tile_b,)

    # feature-major layout (flat feature index == h*D + d, i.e. the plain
    # row-major flatten of the (H, D) reshape, so (B, dim_latent) is reused as-is).
    # TODO(synk): producing latents feature-major upstream would avoid this
    # extra XLA transpose pass over the inputs on the mem-bound path.
    def to_fm(x):
        x = x.astype(compute_dtype).reshape(B, -1)
        x = jnp.pad(x, ((0, B_pad - B), (0, 0)))
        return x.T                                                 # (F, B_pad)

    l1_fm = to_fm(latent_1)                                        # (F1, B_pad)
    l2_fm = to_fm(latent_2)                                        # (F2, B_pad)

    out_row = pl.pallas_call(
        aggregation_kernel,
        out_shape=jax.ShapeDtypeStruct((1, B_pad), jnp.float32),
        grid_spec=pltpu.PrefetchScalarGridSpec(
            num_scalar_prefetch=0,
            grid=grid,
            in_specs=[
                pl.BlockSpec((F1, tile_b), lambda b: (0, b)),
                pl.BlockSpec((F2, tile_b), lambda b: (0, b)),
                pl.BlockSpec((F2, F1), lambda b: (0, 0)),
                pl.BlockSpec((F1, 1), lambda b: (0, 0)),
                pl.BlockSpec((F2, 1), lambda b: (0, 0)),
                pl.BlockSpec((1, H), lambda b: (0, 0)),
            ],
            out_specs=pl.BlockSpec((1, tile_b), lambda b: (0, b)),
        ),
        compiler_params=pltpu.CompilerParams(
            dimension_semantics=("parallel",)),
    )(l1_fm, l2_fm, wbdT, w1_col, w2_col, bias2)

    # lane-dense (1, B_pad) row -> (B, 1) like the PyTorch module
    return out_row[0, :B].reshape(B, 1)


def aggregation_ref(latent_1, latent_2, params, num_heads):
    """Pure-JAX reference mirroring the PyTorch forward exactly."""
    w1, w2, w12, bias = params["w_1"], params["w_2"], params["w_12"], params["bias"]
    D1, D2 = w1.shape[0], w2.shape[0]
    l1 = latent_1.reshape(-1, num_heads, D1)
    l2 = latent_2.reshape(-1, num_heads, D2)
    fo = jnp.einsum("bhi,iho->bho", l1, w1) + jnp.einsum("bhi,iho->bho", l2, w2)
    so = jnp.einsum("bhi,hijo,bhj->bho", l1, w12, l2)
    return jnp.sum(fo + so + bias, axis=1)  # (B, 1)


def _xavier_uniform(key, shape, fan_in, fan_out):
    bound = (6.0 / (fan_in + fan_out)) ** 0.5
    return jax.random.uniform(key, shape, jnp.float32, minval=-bound, maxval=bound)


if __name__ == "__main__":
    # Module config (small): dim_latent_1 = dim_latent_2 = 32, num_heads = 2
    num_heads = 2
    dim_latent_1 = 32
    dim_latent_2 = 32
    d1 = dim_latent_1 // num_heads   # 16
    d2 = dim_latent_2 // num_heads   # 16
    B = 8

    key = jax.random.PRNGKey(0)
    k_l1, k_l2, k_w1, k_w2, k_w12 = jax.random.split(key, 5)

    latent_1 = jax.random.normal(k_l1, (B, dim_latent_1), jnp.float32)
    latent_2 = jax.random.normal(k_l2, (B, dim_latent_2), jnp.float32)

    # deterministic xavier-uniform-style init (fans per torch convention)
    params = {
        "w_1": _xavier_uniform(k_w1, (d1, num_heads, 1),
                               fan_in=num_heads * 1, fan_out=d1 * 1),
        "w_2": _xavier_uniform(k_w2, (d2, num_heads, 1),
                               fan_in=num_heads * 1, fan_out=d2 * 1),
        "w_12": _xavier_uniform(k_w12, (num_heads, d1, d2, 1),
                                fan_in=d1 * d2, fan_out=num_heads * d2),
        "bias": jnp.ones((1, num_heads, 1), jnp.float32),
    }

    out = aggregation_forward(latent_1, latent_2, params, num_heads)
    out = jax.block_until_ready(out)

    ref = aggregation_ref(latent_1, latent_2, params, num_heads)
    assert out.shape == (B, 1), out.shape
    assert jnp.allclose(out, ref, rtol=1e-5, atol=1e-5), (out, ref)

    print("KERNEL_OK")
</pallas_src>

<mosaic_0001>
module attributes {stable_mosaic.version = 11 : i64} {
  func.func @aggregation_kernel(%arg0: i32, %arg1: memref<32x128xf32, #tpu.memory_space<vmem>>, %arg2: memref<32x128xf32, #tpu.memory_space<vmem>>, %arg3: memref<32x32xf32, #tpu.memory_space<vmem>>, %arg4: memref<32x1xf32, #tpu.memory_space<vmem>>, %arg5: memref<32x1xf32, #tpu.memory_space<vmem>>, %arg6: memref<1x2xf32, #tpu.memory_space<vmem>>, %arg7: memref<1x128xf32, #tpu.memory_space<vmem>>) attributes {dimension_semantics = [#tpu.dimension_semantics<parallel>], iteration_bounds = array<i64: 1>, scalar_prefetch = 0 : i64, scratch_operands = 0 : i64, tpu.core_type = #tpu.core_type<tc>, window_params = [{transform_indices = @transform_0, window_bounds = array<i64: 32, 128>}, {transform_indices = @transform_1, window_bounds = array<i64: 32, 128>}, {pipeline_mode = #tpu.pipeline_mode<synchronous>, transform_indices = @transform_2, window_bounds = array<i64: 32, 32>}, {pipeline_mode = #tpu.pipeline_mode<synchronous>, transform_indices = @transform_3, window_bounds = array<i64: 32, 1>}, {pipeline_mode = #tpu.pipeline_mode<synchronous>, transform_indices = @transform_4, window_bounds = array<i64: 32, 1>}, {pipeline_mode = #tpu.pipeline_mode<synchronous>, transform_indices = @transform_5, window_bounds = array<i64: 1, 2>}, {transform_indices = @transform_6, window_bounds = array<i64: 1, 128>}]} {
    %c0 = arith.constant 0 : index
    %c0_0 = arith.constant 0 : index
    %0 = vector.load %arg1[%c0, %c0_0] : memref<32x128xf32, #tpu.memory_space<vmem>>, vector<32x128xf32>
    %c0_1 = arith.constant 0 : index
    %c0_2 = arith.constant 0 : index
    %1 = vector.load %arg2[%c0_1, %c0_2] : memref<32x128xf32, #tpu.memory_space<vmem>>, vector<32x128xf32>
    %c0_3 = arith.constant 0 : index
    %c0_4 = arith.constant 0 : index
    %2 = vector.load %arg3[%c0_3, %c0_4] : memref<32x32xf32, #tpu.memory_space<vmem>>, vector<32x32xf32>
    %cst = arith.constant dense<0.000000e+00> : vector<32x128xf32>
    %3 = tpu.matmul %2, %0, %cst {dimension_numbers = #tpu.dot_dimension_numbers<[1], [0], [0], [1], [0, 0, 1, 1], [], []>} : vector<32x32xf32>, vector<32x128xf32>, vector<32x128xf32> -> vector<32x128xf32>
    %c0_5 = arith.constant 0 : index
    %c0_6 = arith.constant 0 : index
    %4 = vector.load %arg5[%c0_5, %c0_6] : memref<32x1xf32, #tpu.memory_space<vmem>>, vector<32x1xf32>
    %5 = vector.broadcast %4 : vector<32x1xf32> to vector<32x128xf32>
    %6 = arith.addf %3, %5 : vector<32x128xf32>
    %7 = arith.mulf %6, %1 : vector<32x128xf32>
    %cst_7 = arith.constant dense<0.000000e+00> : vector<128xf32>
    %8 = vector.multi_reduction <add>, %7, %cst_7 [0] : vector<32x128xf32> to vector<128xf32>
    %9 = vector.shape_cast %8 : vector<128xf32> to vector<1x128xf32>
    %c0_8 = arith.constant 0 : index
    %c0_9 = arith.constant 0 : index
    %10 = vector.load %arg4[%c0_8, %c0_9] : memref<32x1xf32, #tpu.memory_space<vmem>>, vector<32x1xf32>
    %11 = vector.broadcast %10 : vector<32x1xf32> to vector<32x128xf32>
    %12 = arith.mulf %0, %11 : vector<32x128xf32>
    %cst_10 = arith.constant dense<0.000000e+00> : vector<128xf32>
    %13 = vector.multi_reduction <add>, %12, %cst_10 [0] : vector<32x128xf32> to vector<128xf32>
    %14 = vector.shape_cast %13 : vector<128xf32> to vector<1x128xf32>
    %c0_11 = arith.constant 0 : index
    %c0_12 = arith.constant 0 : index
    %15 = vector.load %arg6[%c0_11, %c0_12] : memref<1x2xf32, #tpu.memory_space<vmem>>, vector<1x2xf32>
    %16 = vector.shape_cast %15 : vector<1x2xf32> to vector<1x1x2xf32>
    %cst_13 = arith.constant dense<0.000000e+00> : vector<1xf32>
    %17 = vector.multi_reduction <add>, %16, %cst_13 [1, 2] : vector<1x1x2xf32> to vector<1xf32>
    %18 = vector.shape_cast %17 : vector<1xf32> to vector<1x1x1xf32>
    %19 = vector.extract %18[0, 0, 0] : f32 from vector<1x1x1xf32>
    %20 = arith.addf %9, %14 : vector<1x128xf32>
    %21 = vector.broadcast %19 : f32 to vector<1x128xf32>
    %22 = arith.addf %20, %21 : vector<1x128xf32>
    %c0_14 = arith.constant 0 : index
    %c0_15 = arith.constant 0 : index
    %23 = vector.load %arg7[%c0_14, %c0_15] : memref<1x128xf32, #tpu.memory_space<vmem>>, vector<1x128xf32>
    tpu.vector_store %arg7[%c0_14, %c0_15], %22 {strides = array<i32>} : memref<1x128xf32, #tpu.memory_space<vmem>>, vector<1x128xf32>,
    return
  }
  func.func @transform_0(%arg0: i32) -> (i32, i32) {
    %c0_i32 = arith.constant 0 : i32
    %c0_i32_0 = arith.constant 0 : i32
    return %c0_i32, %arg0 : i32, i32
  }
  func.func @transform_1(%arg0: i32) -> (i32, i32) {
    %c0_i32 = arith.constant 0 : i32
    %c0_i32_0 = arith.constant 0 : i32
    return %c0_i32, %arg0 : i32, i32
  }
  func.func @transform_2(%arg0: i32) -> (i32, i32) {
    %c0_i32 = arith.constant 0 : i32
    %c0_i32_0 = arith.constant 0 : i32
    %c0_i32_1 = arith.constant 0 : i32
    return %c0_i32, %c0_i32_0 : i32, i32
  }
  func.func @transform_3(%arg0: i32) -> (i32, i32) {
    %c0_i32 = arith.constant 0 : i32
    %c0_i32_0 = arith.constant 0 : i32
    %c0_i32_1 = arith.constant 0 : i32
    return %c0_i32, %c0_i32_0 : i32, i32
  }
  func.func @transform_4(%arg0: i32) -> (i32, i32) {
    %c0_i32 = arith.constant 0 : i32
    %c0_i32_0 = arith.constant 0 : i32
    %c0_i32_1 = arith.constant 0 : i32
    return %c0_i32, %c0_i32_0 : i32, i32
  }
  func.func @transform_5(%arg0: i32) -> (i32, i32) {
    %c0_i32 = arith.constant 0 : i32
    %c0_i32_0 = arith.constant 0 : i32
    %c0_i32_1 = arith.constant 0 : i32
    return %c0_i32, %c0_i32_0 : i32, i32
  }
  func.func @transform_6(%arg0: i32) -> (i32, i32) {
    %c0_i32 = arith.constant 0 : i32
    %c0_i32_0 = arith.constant 0 : i32
    return %c0_i32, %arg0 : i32, i32
  }
}

</mosaic_0001>

<bundles_post_ra>
// kernel: tpu_custom_call.1
= control target key start
LH: loop header
LB: loop body
LE: loop exit
PB: predicated region body
PF: predicated region fallthrough
CT: control target
= control target key end

     0   :  { %11 = vsyncpa [#allocation3], 0  ;;  %s451_s0 = inlined_call_operand.vmem [shape: f32[32,128], index: 0, kind: input, shape index: {}]   ;;  %s452_s1 = inlined_call_operand.vmem [shape: f32[32,128], index: 1, kind: input, shape index: {}]   ;;  %s453_s2 = inlined_call_operand.hbm [shape: f32[32,32], index: 2, kind: input, shape index: {}]   ;;  %s454_s3 = inlined_call_operand.vmem [shape: f32[32,1], index: 3, kind: input, shape index: {}]   ;;  %s455_s4 = inlined_call_operand.vmem [shape: f32[32,1], index: 4, kind: input, shape index: {}]   ;;  %s456_s5 = inlined_call_operand.vmem [shape: f32[1,2], index: 5, kind: input, shape index: {}]   ;;  %s457_s6 = inlined_call_operand.hbm [shape: f32[1,128], index: 6, kind: output, shape index: {}]  }
   0x1   :  { %12 = vsyncpa [#allocation4], 0  ;;  %s340_s21 = smov [#allocation2]  }
   0x2   :  { %s22_s22 = sshll.u32 %s340_s21, 4  ;;  %s23_s22 = int_to_ptr.vmem [resolvable:$true] %s22_s22 }
   0x3   :  { %s304_s23 = scalar_lea.vmem %s23_s22, 512  ;;  %p309_p1 = scmp.lt.s32.totalorder %s23_s22, %s23_s22 }
   0x4   :  { %p305_p0 = scmp.ne.s32.totalorder %s23_s22, %s304_s23  ;;  %p310_p2 = scmp.lt.s32.totalorder %s304_s23, %s304_s23 }
   0x6   :  { %p311_p3 = por %p310_p2, %p309_p1 }
   0x8   :  { %p312_p4 = pnand %p311_p3, %p305_p0 }
   0xa   :  { %315 = shalt.err (!%p312_p4)
}
   0xb   :  { %s341_s24 = smov 128   ;;  %s342_s25 = smov 8  }
   0xc   :  { %28 = dma.hbm_to_vmem [thread:$0]  %s453_s2, 512, %s23_s22, [#allocation3], %s341_s24, %s341_s24, %s342_s25  }
   0xd   :  { %336 = dma.done.wait [#allocation3], 512  }
   0xe   :  { %337 = vsyncadd [#allocation3], 4294966784  ;;  %v343_v0 = vmov 0   ;;  %v386_v1 = vld [vmem:[%s451_s0 + $0x18] sm:$0xff]  ;;  %v391_v2 = vld [vmem:[%s451_s0 + $0x10] sm:$0xff]  ;;  %vm223_vm0 = vcmask 8192  }
   0xf   :  { %295 = vset.pattern.permute.xlu1 %v343_v0  ;;  %294 = vset.pattern.permute.xlu0 %v343_v0  ;;  %v39_v3 = vld [vmem:[%s451_s0 + $0x8] sm:$0xff]  ;;  %v38_v4 = vld [vmem:[%s451_s0] sm:$0xff]  ;;  %vm74_vm1 = vcmask 261120   ;;  %v48_v7 = vld [vmem:[#allocation2 + $0x10] sm:$0xff]  ;;  %s344_s9 = smov [#allocation5]  }
  0x10   :  { %265 = vmatprep.subr.mxu0 %v386_v1  ;;  %279 = vmatprep.subr.mxu1 %v386_v1  ;;  %v222_v5 = vld [vmem:[%s456_s5] sm:$0x1]  ;;  %v47_v8 = vld [vmem:[#allocation2 + $0x8] sm:$0xff]  ;;  %v49_v9 = vld [vmem:[#allocation2 + $0x18] sm:$0xff]  ;;  %s244_s10 = sshll.u32 %s344_s9, 4  ;;  %s245_s10 = int_to_ptr.vmem [resolvable:$true] %s244_s10 }
  0x11   :  { %266 = vmatpush3.msra.mxu0 %v386_v1  ;;  %283 = vmatpush3.msra.mxu1 %v386_v1  ;;  %v46_v6 = vld [vmem:[#allocation2] sm:$0xff]  ;;  %v224_v10 = vsel %vm223_vm0, %v222_v5, 0.0  ;;  %v51_v11 = vld [vmem:[%s455_s4 + $0x8] sm:$0xff]  ;;  %v52_v12 = vld [vmem:[%s455_s4 + $0x10] sm:$0xff]  ;;  %s320_s11 = scalar_lea.vmem %s245_s10, 32  ;;  %p321_p6 = scmp.lt.s32.totalorder %s245_s10, %s245_s10 }
  0x12   :  { %267 = vmatprep.subr.mxu0 %v391_v2  ;;  %280 = vmatprep.subr.mxu1 %v391_v2  ;;  %v185_v13 = vld [vmem:[%s454_s3] sm:$0xff]  ;;  %v186_v14 = vld [vmem:[%s454_s3 + $0x8] sm:$0xff]  ;;  %v53_v15 = vld [vmem:[%s455_s4 + $0x18] sm:$0xff] }
  0x13   :  { %268 = vmatpush3.msra.mxu0 %v391_v2  ;;  %284 = vmatpush3.msra.mxu1 %v391_v2  ;;  %v187_v16 = vld [vmem:[%s454_s3 + $0x10] sm:$0xff]  ;;  %v50_v17 = vld [vmem:[%s455_s4] sm:$0xff]  ;;  %v188_v18 = vld [vmem:[%s454_s3 + $0x18] sm:$0xff] }
  0x14   :  { %269 = vmatprep.subr.mxu0 %v39_v3  ;;  %281 = vmatprep.subr.mxu1 %v39_v3  ;;  %v43_v44 = vld [vmem:[%s452_s1 + $0x8] sm:$0xff]  ;;  %v42_v45 = vld [vmem:[%s452_s1] sm:$0xff]  ;;  %v44_v51 = vld [vmem:[%s452_s1 + $0x10] sm:$0xff] }
  0x15   :  { %270 = vmatpush3.msra.mxu0 %v39_v3  ;;  %285 = vmatpush3.msra.mxu1 %v39_v3  ;;  %v45_v55 = vld [vmem:[%s452_s1 + $0x18] sm:$0xff]  ;;  %s316_s1 = scalar_lea.vmem %s245_s10, 16 }
  0x16   :  { %271 = vmatprep.subr.mxu0 %v38_v4  ;;  %282 = vmatprep.subr.mxu1 %v38_v4  ;;  %p317_p5 = scmp.ne.s32.totalorder %s245_s10, %s316_s1  ;;  %p322_p7 = scmp.lt.s32.totalorder %s320_s11, %s316_s1 }
  0x17   :  { %272 = vmatpush3.msra.mxu0 %v38_v4  ;;  %286 = vmatpush3.msra.mxu1 %v38_v4 }
  0x18   :  { %273 = vmatprep.mubr.msk.f32.mxu0 %vm74_vm1, %v46_v6  ;;  %276 = vmatprep.mubr.msk.f32.mxu1 %vm74_vm1, %v48_v7  ;;  %p323_p8 = por %p322_p7, %p321_p6 }
  0x19   :  { %274 = vmatmul.mubr.msk.f32.vlgmr.msra.gmra.mxu0 %vm74_vm1, %v47_v8  ;;  %277 = vmatmul.mubr.msk.f32.vlgmr.msra.gmra.mxu1 %vm74_vm1, %v49_v9 }
  0x1a   :  { %225 = vadd.xlane.f32.xlu0 %v224_v10  ;;  %61 = vperm.xlu1 %295, %v51_v11   ;;  %p324_p9 = pnand %p323_p8, %p317_p5 }
  0x1e   :  { %66 = vperm.xlu1 %295, %v52_v12  }
  0x22   :  { %191 = vperm.xlu1 %295, %v185_v13  }
  0x26   :  { %196 = vperm.xlu1 %295, %v186_v14  }
  0x2a   :  { %71 = vperm.xlu1 %295, %v53_v15  }
  0x2e   :  { %201 = vperm.xlu1 %295, %v187_v16  }
  0x30   :  { %56 = vperm.xlu0 %294, %v50_v17  }
  0x32   :  { %206 = vperm.xlu1 %295, %v188_v18  }
  0x95   :  { %v62_v25 = vpop.permute.xlu1 %61 }
  0x99   :  { %v67_v27 = vpop.permute.xlu1 %66 }
  0x9d   :  { %v192_v28 = vpop.permute.xlu1 %191 }
  0x9e   :  { %v209_v32 = vmul.f32 %v192_v28, %v38_v4 }
  0xa1   :  { %v197_v29 = vpop.permute.xlu1 %196 }
  0xa2   :  { %v210_v33 = vmul.f32 %v197_v29, %v39_v3 }
  0xa3   :  { %v226_v19 = vpop.xlane.xlu0 %225 }
  0xa4   :  { %v227_v20 = vrot.slane %v226_v19, 4  ;;  %v213_v34 = vadd.f32 %v210_v33, %v209_v32 }
  0xa5   :  { %v72_v30 = vpop.permute.xlu1 %71 }
  0xa6   :  { %v228_v21 = vadd.f32 %v227_v20, %v226_v19 }
  0xa8   :  { %v229_v22 = vrot.slane %v228_v21, 2 }
  0xa9   :  { %v202_v31 = vpop.permute.xlu1 %201 }
  0xaa   :  { %v230_v23 = vadd.f32 %v229_v22, %v228_v21  ;;  %v211_v35 = vmul.f32 %v202_v31, %v391_v2 }
  0xab   :  { %v57_v40 = vpop.permute.xlu0 %56 }
  0xac   :  { %v231_v24 = vrot.slane %v230_v23, 1  ;;  %v214_v37 = vadd.f32 %v213_v34, %v211_v35 }
  0xad   :  { %v207_v36 = vpop.permute.xlu1 %206 }
  0xae   :  { %v232_v26 = vadd.f32 %v231_v24, %v230_v23  ;;  %v212_v38 = vmul.f32 %v207_v36, %v386_v1 }
  0xb0   :  { %287 = vpush %v232_v26  ;;  %v215_v39 = vadd.f32 %v214_v37, %v212_v38 }
  0xb2   :  { %v216_v48 = vrot.slane %v215_v39, 4 }
  0xb4   :  { %v217_v56 = vadd.f32 %v216_v48, %v215_v39 }
  0xb6   :  { %v218_v61 = vrot.slane %v217_v56, 2 }
  0xb8   :  { %v219_v0 = vadd.f32 %v218_v61, %v217_v56 }
  0xba   :  { %v220_v4 = vrot.slane %v219_v0, 1 }
  0xbc   :  { %v221_v7 = vadd.f32 %v220_v4, %v219_v0 }
  0xd9   :  { %v275_v41 = vpop.f32.mrf.mxu0  ;;  %v278_v42 = vpop.f32.mrf.mxu1 }
  0xda   :  { %v159_v43 = vadd.f32 %v275_v41, %v62_v25  ;;  %v169_v53 = vadd.f32 %v278_v42, %v72_v30 }
  0xdb   :  { %v153_v46 = vpop.f32.mrf.mxu0  ;;  %v163_v47 = vpop.f32.mrf.mxu1 }
  0xdc   :  { %v154_v49 = vadd.f32 %v153_v46, %v57_v40  ;;  %v164_v50 = vadd.f32 %v163_v47, %v67_v27  ;;  %v173_v52 = vmul.f32 %v159_v43, %v43_v44  ;;  %v175_v59 = vmul.f32 %v169_v53, %v45_v55 }
  0xde   :  { %v172_v54 = vmul.f32 %v154_v49, %v42_v45  ;;  %v174_v58 = vmul.f32 %v164_v50, %v44_v51 }
  0xe0   :  { %v176_v57 = vadd.f32 %v173_v52, %v172_v54 }
  0xe1   :  { %s288_s8 = spop %287 }
  0xe2   :  { %v177_v60 = vadd.f32 %v176_v57, %v174_v58  ;;  %v235_v9 = vstv %s288_s8 }
  0xe4   :  { %v178_v62 = vadd.f32 %v177_v60, %v175_v59 }
  0xe6   :  { %v179_v63 = vrot.slane %v178_v62, 4 }
  0xe8   :  { %v180_v1 = vadd.f32 %v179_v63, %v178_v62 }
  0xea   :  { %v181_v2 = vrot.slane %v180_v1, 2 }
  0xec   :  { %v182_v3 = vadd.f32 %v181_v2, %v180_v1 }
  0xee   :  { %v183_v5 = vrot.slane %v182_v3, 1 }
  0xf0   :  { %v184_v6 = vadd.f32 %v183_v5, %v182_v3 }
  0xf2   :  { %v234_v8 = vadd.f32 %v221_v7, %v184_v6 }
  0xf4   :  { %v236_v10 = vadd.f32 %v235_v9, %v234_v8 }
  0xf6   :  { %237 = vst [vmem:[#allocation5] sm:$0x1] %v236_v10 }
  0xf7   :  { %327 = shalt.err (!%p324_p9)
}
  0xf8   :  { %247 = dma.vmem_to_hbm [thread:$0]  %s245_s10, 16, %s457_s6, [#allocation4]  }
  0xf9   :  { %338 = dma.done.wait [#allocation4], 16  }
  0xfa   :  { %339 = vsyncadd [#allocation4], 4294967280 }
  0xfb   :  { %251 = vsyncpa [#allocation3], 1 }
  0xfc   :  { %252 = vsyncpa [#allocation4], 1 }

</bundles_post_ra>
